<compile_context>
chip_gen: v7x
topology: tpu7x:2x2x1
jax: 0.10.0
libtpu: 0.0.40
codegen_flags: <defaults>
</compile_context>

<pallas_src>
import math

import jax
import jax.numpy as jnp
from jax.experimental import pallas as pl
from jax.experimental.pallas import tpu as pltpu


# ---------------------------------------------------------------------------
# Kernels (pure VPU elementwise; gamma block (1, tn) broadcasts over sublanes)
# ---------------------------------------------------------------------------
def _layer_scale_kernel(x_ref, g_ref, o_ref):
    # Compute in f32, downcast once (gamma is passed as f32).
    o_ref[...] = (x_ref[...].astype(jnp.float32) * g_ref[...]).astype(o_ref.dtype)


def _layer_scale_residual_kernel(x_ref, r_ref, g_ref, o_ref):
    o_ref[...] = (
        x_ref[...].astype(jnp.float32) * g_ref[...] + r_ref[...].astype(jnp.float32)
    ).astype(o_ref.dtype)


# ---------------------------------------------------------------------------
# Hardware / tiling helpers
# ---------------------------------------------------------------------------
def _round_up(x: int, m: int) -> int:
    return ((x + m - 1) // m) * m


def _vmem_capacity_bytes() -> int:
    try:
        cap = int(getattr(pltpu.get_tpu_info(), "vmem_capacity_bytes", 0))
        if cap > 0:
            return cap
    except Exception:
        pass
    return 64 * 1024 * 1024  # conservative default (v7x per-TC capacity)


def _num_tensorcores_per_chip() -> int:
    try:
        kind = str(jax.devices()[0].device_kind).lower()
        if "v7" in kind:
            return 2
    except Exception:
        pass
    return 1


_MAX_REPACK_LANES = 1024
_MAX_CHANNEL_TILE = 16384


def _choose_repack(n_tokens: int, dim: int) -> int:
    """Number of tokens folded into one lane-dense row (1 = keep layout as-is)."""
    if dim >= 128 or dim <= 0 or n_tokens <= 0:
        return 1
    r0 = 128 // math.gcd(dim, 128)  # smallest r with (r * dim) % 128 == 0
    best = 1
    r = r0
    while r * dim <= _MAX_REPACK_LANES and n_tokens % r == 0:
        best = r
        r *= 2
    return best


def _choose_tiles(n_rows: int, lanes: int, dtype_bytes: int, with_residual: bool,
                  vmem_capacity: int) -> tuple[int, int]:
    # Sublane packing: 8 rows for 32-bit dtypes, 16 for bf16/f16, 32 for 8-bit.
    sub = max(8, 32 // max(1, dtype_bytes))

    # Channel tile: full width is always legal; if 128-divisible, cap it so per-block
    # VMEM stays bounded independent of lane count.
    if lanes % 128 == 0:
        tn = min(lanes, _MAX_CHANNEL_TILE)
    else:
        tn = lanes

    # Per-row VMEM footprint of one grid step: double-buffered x/(residual)/out blocks
    # plus headroom for the in-kernel f32 upcast temporaries.
    n_io = 3 if with_residual else 2
    per_row = 2 * n_io * tn * dtype_bytes + tn * 4
    budget = int(0.7 * vmem_capacity)
    max_tm_budget = max(sub, (budget // per_row) // sub * sub)

    # Dtype-aware cap: keep per-step traffic large enough to amortize ~0.35us/step.
    max_tm_cap = 1024 * max(1, 4 // dtype_bytes)   # 1024 f32 / 2048 bf16 / 4096 int8

    tm = min(max_tm_cap, max_tm_budget)

    if n_rows <= tm:
        # Whole token range fits one tile.
        if (pl.cdiv(lanes, tn) == 1 and _num_tensorcores_per_chip() > 1
                and n_rows >= 2 * sub):
            # Balanced 2-way split so both v7x TensorCores get (near-)equal work.
            tm = _round_up(pl.cdiv(n_rows, 2), sub)
        else:
            tm = n_rows  # block == full array extent: always a legal block shape
    return tm, tn


# ---------------------------------------------------------------------------
# Wrapper
# ---------------------------------------------------------------------------
def layer_scale(x: jax.Array, gamma: jax.Array, *, residual: jax.Array | None = None,
                donate_x: bool = False) -> jax.Array:
    """Compute x * gamma (optionally + residual) where gamma has shape (dim,)."""
    orig_shape = x.shape
    dim = orig_shape[-1]
    assert gamma.shape == (dim,), f"gamma must have shape ({dim},), got {gamma.shape}"

    x2d = x.reshape(-1, dim)
    n_tokens = x2d.shape[0]
    if n_tokens == 0:
        return x
    dtype_bytes = jnp.dtype(x.dtype).itemsize

    # gamma stays f32; the multiply is done in f32 in-kernel, downcast once to x.dtype.
    g = gamma.astype(jnp.float32)

    r2d = None
    if residual is not None:
        assert residual.shape == orig_shape and residual.dtype == x.dtype
        r2d = residual.reshape(-1, dim)

    # Lane-dense repacking for small dims.
    repack = _choose_repack(n_tokens, dim)
    lanes = dim * repack
    n_rows = n_tokens // repack
    if repack > 1:
        x2d = x2d.reshape(n_rows, lanes)
        if r2d is not None:
            r2d = r2d.reshape(n_rows, lanes)
        g = jnp.tile(g, (repack,))
    g2d = g.reshape(1, lanes)

    vmem_capacity = _vmem_capacity_bytes()
    tm, tn = _choose_tiles(n_rows, lanes, dtype_bytes, r2d is not None, vmem_capacity)

    # Channel axis outer, token axis inner: gamma's block index is constant over the
    # inner loop so its (1, tn) block is not re-fetched every step.
    grid = (pl.cdiv(lanes, tn), pl.cdiv(n_rows, tm))

    n_elems = n_tokens * dim
    cost = pl.CostEstimate(
        flops=n_elems * (2 if r2d is not None else 1),
        transcendentals=0,
        bytes_accessed=(3 if r2d is not None else 2) * n_elems * dtype_bytes + lanes * 4,
    )

    x_spec = pl.BlockSpec((tm, tn), lambda j, i: (i, j))
    g_spec = pl.BlockSpec((1, tn), lambda j, i: (0, j))

    if r2d is None:
        kernel = _layer_scale_kernel
        operands = (x2d, g2d)
        in_specs = [x_spec, g_spec]
    else:
        kernel = _layer_scale_residual_kernel
        operands = (x2d, r2d, g2d)
        in_specs = [x_spec, x_spec, g_spec]

    vmem_limit = min(int(0.75 * vmem_capacity), 128 * 1024 * 1024)

    out = pl.pallas_call(
        kernel,
        out_shape=jax.ShapeDtypeStruct((n_rows, lanes), x.dtype),
        grid_spec=pltpu.PrefetchScalarGridSpec(
            num_scalar_prefetch=0,
            grid=grid,
            in_specs=in_specs,
            out_specs=x_spec,
        ),
        compiler_params=pltpu.CompilerParams(
            dimension_semantics=("parallel", "parallel"),
            vmem_limit_bytes=vmem_limit,
        ),
        cost_estimate=cost,
        # Only reuses x's buffer if the caller actually donates it through jit;
        # otherwise XLA inserts a copy (harmless, just no win).
        input_output_aliases=({0: 0} if donate_x else {}),
    )(*operands)

    return out.reshape(orig_shape)


# TODO(synk): the PyTorch `inplace=True` path (x.mul_) has no JAX equivalent beyond
# buffer donation (donate_x=True through jit); semantics are identical either way.


if __name__ == "__main__":
    key = jax.random.PRNGKey(0)
    k1, k2, k3 = jax.random.split(key, 3)

    # Shapes consistent with LayerScale usage inside a transformer block.
    batch, seq, dim = 2, 8, 32
    init_values = 1e-5
    gamma = jnp.full((dim,), init_values, dtype=jnp.float32)

    # --- f32 (exercises the lane-dense repack path: dim=32 -> lanes=512) ---
    x = jax.random.normal(k1, (batch, seq, dim), dtype=jnp.float32)
    y = layer_scale(x, gamma)
    jax.block_until_ready(y)
    y_ref = x * gamma
    assert y.shape == x.shape and y.dtype == x.dtype
    assert jnp.allclose(y, y_ref, atol=1e-6, rtol=1e-6)

    # --- bf16 activations with f32 gamma (f32 compute in-kernel, single downcast) ---
    x_bf16 = x.astype(jnp.bfloat16)
    y_bf16 = layer_scale(x_bf16, gamma)
    jax.block_until_ready(y_bf16)
    y_bf16_ref = (x_bf16.astype(jnp.float32) * gamma).astype(jnp.bfloat16)
    assert y_bf16.shape == x.shape and y_bf16.dtype == jnp.bfloat16
    assert jnp.allclose(
        y_bf16.astype(jnp.float32), y_bf16_ref.astype(jnp.float32), atol=1e-2, rtol=1e-2
    )

    # --- token count not divisible by the repack factor -> tn=dim fallback path ---
    x_odd = jax.random.normal(k2, (3, 5, dim), dtype=jnp.float32)
    y_odd = layer_scale(x_odd, gamma)
    jax.block_until_ready(y_odd)
    assert jnp.allclose(y_odd, x_odd * gamma, atol=1e-6, rtol=1e-6)

    # --- fused residual variant: x * gamma + residual ---
    res = jax.random.normal(k3, (batch, seq, dim), dtype=jnp.float32)
    y_res = layer_scale(x, gamma, residual=res)
    jax.block_until_ready(y_res)
    assert jnp.allclose(y_res, x * gamma + res, atol=1e-6, rtol=1e-6)

    print("KERNEL_OK")
</pallas_src>

<mosaic_0001>
module attributes {stable_mosaic.version = 11 : i64} {
  func.func @_layer_scale_kernel(%arg0: i32, %arg1: i32, %arg2: memref<1x512xf32, #tpu.memory_space<vmem>>, %arg3: memref<1x512xf32, #tpu.memory_space<vmem>>, %arg4: memref<1x512xf32, #tpu.memory_space<vmem>>) attributes {dimension_semantics = [#tpu.dimension_semantics<parallel>, #tpu.dimension_semantics<parallel>], iteration_bounds = array<i64: 1, 1>, scalar_prefetch = 0 : i64, scratch_operands = 0 : i64, tpu.core_type = #tpu.core_type<tc>, window_params = [{transform_indices = @transform_0, window_bounds = array<i64: 1, 512>}, {transform_indices = @transform_1, window_bounds = array<i64: 1, 512>}, {transform_indices = @transform_2, window_bounds = array<i64: 1, 512>}]} {
    %c0 = arith.constant 0 : index
    %c0_0 = arith.constant 0 : index
    %0 = vector.load %arg2[%c0, %c0_0] : memref<1x512xf32, #tpu.memory_space<vmem>>, vector<1x512xf32>
    %c0_1 = arith.constant 0 : index
    %c0_2 = arith.constant 0 : index
    %1 = vector.load %arg3[%c0_1, %c0_2] : memref<1x512xf32, #tpu.memory_space<vmem>>, vector<1x512xf32>
    %2 = arith.mulf %0, %1 : vector<1x512xf32>
    %c0_3 = arith.constant 0 : index
    %c0_4 = arith.constant 0 : index
    %3 = vector.load %arg4[%c0_3, %c0_4] : memref<1x512xf32, #tpu.memory_space<vmem>>, vector<1x512xf32>
    tpu.vector_store %arg4[%c0_3, %c0_4], %2 {strides = array<i32>} : memref<1x512xf32, #tpu.memory_space<vmem>>, vector<1x512xf32>,
    return
  }
  func.func @transform_0(%arg0: i32, %arg1: i32) -> (i32, i32) {
    %c0_i32 = arith.constant 0 : i32
    return %arg1, %arg0 : i32, i32
  }
  func.func @transform_1(%arg0: i32, %arg1: i32) -> (i32, i32) {
    %c0_i32 = arith.constant 0 : i32
    %c0_i32_0 = arith.constant 0 : i32
    return %c0_i32, %arg0 : i32, i32
  }
  func.func @transform_2(%arg0: i32, %arg1: i32) -> (i32, i32) {
    %c0_i32 = arith.constant 0 : i32
    return %arg1, %arg0 : i32, i32
  }
}

</mosaic_0001>

<bundles_post_ra>
// kernel: tpu_custom_call.1
= control target key start
LH: loop header
LB: loop body
LE: loop exit
PB: predicated region body
PF: predicated region fallthrough
CT: control target
= control target key end

     0   :  { %7 = vsyncpa [#allocation3], 0  ;;  %s189_s0 = inlined_call_operand.hbm [shape: f32[1,512], index: 0, kind: input, shape index: {}]   ;;  %s190_s1 = inlined_call_operand.hbm [shape: f32[1,512], index: 1, kind: input, shape index: {}]   ;;  %s191_s2 = inlined_call_operand.hbm [shape: f32[1,512], index: 2, kind: output, shape index: {}]  }
   0x1   :  { %8 = vsyncpa [#allocation6], 0 }
   0x2   :  { %9 = vsyncpa [#allocation4], 0  ;;  %s135_s9 = smov [#allocation2]   ;;  %s136_s11 = smov [#allocation5]  }
   0x3   :  { %s16_s10 = sshll.u32 %s135_s9, 4  ;;  %s26_s12 = sshll.u32 %s136_s11, 4  ;;  %s17_s10 = int_to_ptr.vmem [resolvable:$true] %s16_s10  ;;  %s27_s12 = int_to_ptr.vmem [resolvable:$true] %s26_s12 }
   0x4   :  { %s63_s15 = scalar_lea.hbm %s189_s0, 64 }
   0x5   :  { %p64_p0 = scmp.ne.s32.totalorder %s189_s0, %s63_s15  ;;  %p67_p1 = scmp.lt.u32.totalorder %s63_s15, %s189_s0 }
   0x7   :  { %p69_p2 = pnand %p67_p1, %p64_p0 }
   0x9   :  { %72 = shalt.err (!%p69_p2)
}
   0xa   :  { %s73_s20 = scalar_lea.vmem %s17_s10, 64  ;;  %p78_p4 = scmp.lt.s32.totalorder %s17_s10, %s17_s10 }
   0xb   :  { %p74_p3 = scmp.ne.s32.totalorder %s17_s10, %s73_s20  ;;  %p79_p5 = scmp.lt.s32.totalorder %s73_s20, %s73_s20 }
   0xd   :  { %p80_p6 = por %p79_p5, %p78_p4 }
   0xf   :  { %p81_p7 = pnand %p80_p6, %p74_p3 }
  0x11   :  { %84 = shalt.err (!%p81_p7)
}
  0x12   :  { %19 = dma.hbm_to_vmem [thread:$0]  %s189_s0, 64, %s17_s10, [#allocation3]  }
  0x13   :  { %s85_s25 = scalar_lea.hbm %s190_s1, 64 }
  0x14   :  { %p86_p8 = scmp.ne.s32.totalorder %s190_s1, %s85_s25  ;;  %p89_p9 = scmp.lt.u32.totalorder %s85_s25, %s190_s1 }
  0x16   :  { %p91_p10 = pnand %p89_p9, %p86_p8 }
  0x18   :  { %94 = shalt.err (!%p91_p10)
}
  0x19   :  { %s95_s30 = scalar_lea.vmem %s27_s12, 64  ;;  %p100_p12 = scmp.lt.s32.totalorder %s27_s12, %s27_s12 }
  0x1a   :  { %p96_p11 = scmp.ne.s32.totalorder %s27_s12, %s95_s30  ;;  %p101_p13 = scmp.lt.s32.totalorder %s95_s30, %s95_s30 }
  0x1c   :  { %p102_p0 = por %p101_p13, %p100_p12 }
  0x1e   :  { %p103_p1 = pnand %p102_p0, %p96_p11 }
  0x20   :  { %106 = shalt.err (!%p103_p1)
}
  0x21   :  { %29 = dma.hbm_to_vmem [thread:$0]  %s190_s1, 64, %s27_s12, [#allocation6]  }
  0x22   :  { %129 = dma.done.wait [#allocation3], 64  }
  0x23   :  { %130 = vsyncadd [#allocation3], 4294967232 }
  0x24   :  { %131 = dma.done.wait [#allocation6], 64  }
  0x25   :  { %132 = vsyncadd [#allocation6], 4294967232  ;;  %v39_v0 = vlaneseq  ;;  %s137_s4 = smov [#allocation7]   ;;  %v36_v1 = vld [vmem:[#allocation2] sm:$0xf] }
  0x26   :  { %s50_s5 = sshll.u32 %s137_s4, 4  ;;  %v37_v2 = vld [vmem:[#allocation5] sm:$0xf]  ;;  %s51_s5 = int_to_ptr.vmem [resolvable:$true] %s50_s5 }
  0x27   :  { %vm41_vm0 = vcmp.lt.s32.totalorder %v39_v0, 512  ;;  %v38_v3 = vmul.f32 %v37_v2, %v36_v1  ;;  %s107_s6 = scalar_lea.vmem %s51_s5, 64  ;;  %p112_p3 = scmp.lt.s32.totalorder %s51_s5, %s51_s5 }
  0x28   :  { %p108_p2 = scmp.ne.s32.totalorder %s51_s5, %s107_s6  ;;  %p113_p4 = scmp.lt.s32.totalorder %s107_s6, %s107_s6 }
  0x29   :  { %43 = vst.msk [vmem:[#allocation7] sm:$0xf] %vm41_vm0, %v38_v3 }
  0x2a   :  { %p114_p5 = por %p113_p4, %p112_p3 }
  0x2c   :  { %p115_p6 = pnand %p114_p5, %p108_p2 }
  0x2e   :  { %118 = shalt.err (!%p115_p6)
}
  0x2f   :  { %s119_s8 = scalar_lea.hbm %s191_s2, 64 }
  0x30   :  { %p120_p7 = scmp.ne.s32.totalorder %s191_s2, %s119_s8  ;;  %p123_p8 = scmp.lt.u32.totalorder %s119_s8, %s191_s2 }
  0x32   :  { %p125_p9 = pnand %p123_p8, %p120_p7 }
  0x34   :  { %128 = shalt.err (!%p125_p9)
}
  0x35   :  { %53 = dma.vmem_to_hbm [thread:$0]  %s51_s5, 64, %s191_s2, [#allocation4]  }
  0x36   :  { %133 = dma.done.wait [#allocation4], 64  }
  0x37   :  { %134 = vsyncadd [#allocation4], 4294967232 }
  0x38   :  { %57 = vsyncpa [#allocation3], 1 }
  0x39   :  { %58 = vsyncpa [#allocation6], 1 }
  0x3a   :  { %59 = vsyncpa [#allocation4], 1 }

</bundles_post_ra>
